<compile_context>
chip_gen: v5e
topology: v5e:2x2
jax: 0.10.0
libtpu: 0.0.40
codegen_flags: <defaults>
</compile_context>

<pallas_src>
import functools

import jax
import jax.numpy as jnp
from jax.experimental import pallas as pl
from jax.experimental.pallas import tpu as pltpu

EPS = 1e-6


def _round_up(a, b):
    return (a + b - 1) // b * b


def _cdiv(a, b):
    return (a + b - 1) // b


def _make_kernel(d_true, d_pad):
    """Fused LN -> Linear -> residual kernel for true feature dim d_true padded to d_pad."""
    need_mask = d_true != d_pad
    inv_n = 1.0 / d_true
    inv_nm1 = 1.0 / (d_true - 1)

    def kernel(x_ref, w_ref, p_ref, o_ref):
        # x_ref: (TM, Dp) row tile.  w_ref: (Dp, Dp) resident weight.
        # p_ref: (8, Dp) f32 params: row 0 = a_2, row 1 = b_2, row 2 = bias.
        x = x_ref[...].astype(jnp.float32)

        # ---- LayerNorm statistics in f32 on the VPU (torch semantics) ----
        mean = jnp.sum(x, axis=-1, keepdims=True) * inv_n
        xc = x - mean
        if need_mask:  # only when D % 128 != 0: zero the padded lanes out of the stats
            lane = jax.lax.broadcasted_iota(jnp.int32, (1, d_pad), 1)
            xc = jnp.where(lane < d_true, xc, 0.0)
        var_u = jnp.sum(xc * xc, axis=-1, keepdims=True) * inv_nm1
        inv_std = 1.0 / (jnp.sqrt(var_u) + EPS)   # exact: one reciprocal per row

        p = p_ref[...].astype(jnp.float32)
        a2 = p[0:1, :]
        b2 = p[1:2, :]
        bias = p[2:3, :]
        normed = a2 * (xc * inv_std) + b2

        # ---- sublayer: Linear(D, D) on the MXU with f32 accumulation ----
        y = jnp.dot(normed.astype(w_ref.dtype), w_ref[...],
                    preferred_element_type=jnp.float32)
        y = y + bias

        # ---- dropout (eval mode -> identity) + residual add ----
        o_ref[...] = (x + y).astype(o_ref.dtype)

    return kernel


@functools.partial(jax.jit, static_argnames=("row_tile",))
def sublayer_connection(x, a2, b2, w, bias, *, row_tile=512):
    """x: (B, S, D). Returns x + Linear(LayerNorm(x)) (dropout = identity)."""
    B, S, D = x.shape
    if D < 2:
        raise ValueError("unbiased std (divide by D-1) needs D >= 2")
    R = B * S

    Dp = _round_up(D, 128)          # lane-dense feature axis
    pad_cols = Dp != D

    # Sublane packing granularity: bf16 packs 16 rows / vreg, f32 packs 8.
    pack = 16 if x.dtype == jnp.bfloat16 else 8
    tile = max(pack, min(_round_up(row_tile, pack), _round_up(R, pack)))
    # Guarantee >= 2 grid steps when possible so both v7x TensorCores get work.
    if _cdiv(R, tile) < 2 and R > pack:
        tile = max(pack, _round_up(_cdiv(R, 2), pack))
    grid = (_cdiv(R, tile),)        # partial last row-tile handled by Pallas

    xf = x.reshape(R, D)
    wp = w
    if pad_cols:
        xf = jnp.pad(xf, ((0, 0), (0, Dp - D)))
        wp = jnp.pad(w, ((0, Dp - D), (0, Dp - D)))

    params = jnp.zeros((8, Dp), jnp.float32)
    params = params.at[0, :D].set(a2.astype(jnp.float32))
    params = params.at[1, :D].set(b2.astype(jnp.float32))
    params = params.at[2, :D].set(bias.astype(jnp.float32))

    x_bytes = jnp.dtype(x.dtype).itemsize
    w_bytes = jnp.dtype(w.dtype).itemsize

    cost = pl.CostEstimate(
        flops=2 * R * Dp * Dp,
        transcendentals=2 * R,                       # sqrt + reciprocal per row
        bytes_accessed=2 * R * Dp * x_bytes + Dp * Dp * w_bytes + 8 * Dp * 4,
    )

    # VMEM plan: x/out tiles double-buffered by the pipeline; weight + params resident
    # (single buffer).  Budget from the actual chip's VMEM with ~20% headroom.
    vmem_needed = 4 * tile * Dp * x_bytes + Dp * Dp * w_bytes + 8 * Dp * 4
    vmem_cap = 64 * 1024 * 1024                      # conservative fallback (v7x-sized)
    try:
        vmem_cap = int(pltpu.get_tpu_info().vmem_capacity_bytes)
    except Exception:                                # e.g. interpret mode off-TPU
        pass
    budget = int(vmem_cap * 0.8)                     # headroom for compiler scratch
    vmem_limit = min(budget, max(int(vmem_needed * 1.25), 16 * 1024 * 1024))

    out = pl.pallas_call(
        _make_kernel(D, Dp),
        out_shape=jax.ShapeDtypeStruct((R, Dp), x.dtype),
        grid_spec=pltpu.PrefetchScalarGridSpec(
            num_scalar_prefetch=0,
            grid=grid,
            in_specs=[
                pl.BlockSpec((tile, Dp), lambda i: (i, 0)),          # x row tile
                pl.BlockSpec(memory_space=pltpu.MemorySpace.VMEM),   # W, resident
                pl.BlockSpec(memory_space=pltpu.MemorySpace.VMEM),   # a_2 / b_2 / bias
            ],
            out_specs=pl.BlockSpec((tile, Dp), lambda i: (i, 0)),
        ),
        compiler_params=pltpu.CompilerParams(
            dimension_semantics=("parallel",),
            vmem_limit_bytes=vmem_limit),
        cost_estimate=cost,
    )(xf, wp, params)

    if pad_cols:
        out = out[:, :D]
    return out.reshape(B, S, D)


def _reference(x, a2, b2, w, bias, eps=EPS):
    x32 = x.astype(jnp.float32)
    d = x.shape[-1]
    mean = jnp.mean(x32, axis=-1, keepdims=True)
    xc = x32 - mean
    std = jnp.sqrt(jnp.sum(xc * xc, axis=-1, keepdims=True) / (d - 1))
    normed = a2.astype(jnp.float32) * xc / (std + eps) + b2.astype(jnp.float32)
    y = normed @ w.astype(jnp.float32) + bias.astype(jnp.float32)
    return x32 + y


if __name__ == "__main__":
    key = jax.random.PRNGKey(0)

    # --- Test 1: module-style small shapes (size=32), f32, feature axis padded to 128 ---
    B, S, D = 2, 8, 32
    k1, k2, k3, key = jax.random.split(key, 4)
    x = jax.random.normal(k1, (B, S, D), dtype=jnp.float32)
    a2 = 1.0 + 0.1 * jax.random.normal(k2, (D,), dtype=jnp.float32)
    b2 = 0.1 * jax.random.normal(k3, (D,), dtype=jnp.float32)
    kw, key = jax.random.split(key)
    w = jax.random.normal(kw, (D, D), dtype=jnp.float32) / jnp.sqrt(D)
    bias = 0.05 * jnp.ones((D,), dtype=jnp.float32)

    out = jax.block_until_ready(sublayer_connection(x, a2, b2, w, bias))
    ref = _reference(x, a2, b2, w, bias)
    assert out.shape == (B, S, D)
    # Tolerance covers MXU bf16-pass behavior for f32 operands on real hardware.
    assert jnp.allclose(out, ref, atol=1e-2, rtol=1e-2), "f32 mismatch vs reference"

    # --- Test 2: bf16 activations/weights, ragged row count (partial last row tile) ---
    B2, S2, D2 = 3, 40, 128   # R = 120 rows, tile = 64 -> grid of 2, last tile partial
    k4, k5, key = jax.random.split(key, 3)
    x2 = jax.random.normal(k4, (B2, S2, D2), dtype=jnp.float32).astype(jnp.bfloat16)
    a2b = jnp.ones((D2,), dtype=jnp.float32)
    b2b = jnp.zeros((D2,), dtype=jnp.float32)
    w2 = (jax.random.normal(k5, (D2, D2), dtype=jnp.float32)
          / jnp.sqrt(D2)).astype(jnp.bfloat16)
    bias2 = jnp.zeros((D2,), dtype=jnp.float32)

    out2 = jax.block_until_ready(
        sublayer_connection(x2, a2b, b2b, w2, bias2, row_tile=64))
    ref2 = _reference(x2, a2b, b2b, w2, bias2)
    assert out2.shape == (B2, S2, D2)
    assert jnp.allclose(out2.astype(jnp.float32), ref2, atol=3e-2, rtol=3e-2), \
        "bf16 mismatch vs reference"

    print("KERNEL_OK")
</pallas_src>

<mosaic_0001>
module attributes {stable_mosaic.version = 11 : i64} {
  func.func @kernel(%arg0: i32, %arg1: memref<8x128xf32, #tpu.memory_space<vmem>>, %arg2: memref<128x128xf32, #tpu.memory_space<vmem>>, %arg3: memref<8x128xf32, #tpu.memory_space<vmem>>, %arg4: memref<8x128xf32, #tpu.memory_space<vmem>>) attributes {dimension_semantics = [#tpu.dimension_semantics<parallel>], iteration_bounds = array<i64: 2>, scalar_prefetch = 0 : i64, scratch_operands = 0 : i64, tpu.core_type = #tpu.core_type<tc>, window_params = [{transform_indices = @transform_0, window_bounds = array<i64: 8, 128>}, {pipeline_mode = #tpu.pipeline_mode<synchronous>, transform_indices = @transform_1, window_bounds = array<i64: 128, 128>}, {pipeline_mode = #tpu.pipeline_mode<synchronous>, transform_indices = @transform_2, window_bounds = array<i64: 8, 128>}, {transform_indices = @transform_3, window_bounds = array<i64: 8, 128>}]} {
    %c0 = arith.constant 0 : index
    %c0_0 = arith.constant 0 : index
    %0 = vector.load %arg1[%c0, %c0_0] : memref<8x128xf32, #tpu.memory_space<vmem>>, vector<8x128xf32>
    %cst = arith.constant dense<0.000000e+00> : vector<8xf32>
    %1 = vector.multi_reduction <add>, %0, %cst [1] : vector<8x128xf32> to vector<8xf32>
    %2 = vector.shape_cast %1 : vector<8xf32> to vector<8x1xf32>
    %cst_1 = arith.constant 3.125000e-02 : f32
    %3 = vector.broadcast %cst_1 : f32 to vector<8x1xf32>
    %4 = arith.mulf %2, %3 : vector<8x1xf32>
    %5 = vector.broadcast %4 : vector<8x1xf32> to vector<8x128xf32>
    %6 = arith.subf %0, %5 : vector<8x128xf32>
    %7 = tpu.iota {dimensions = array<i32: 1>} : vector<1x128xi32>
    %c32_i32 = arith.constant 32 : i32
    %8 = vector.broadcast %c32_i32 : i32 to vector<1x128xi32>
    %9 = arith.cmpi slt, %7, %8 : vector<1x128xi32>
    %cst_2 = arith.constant 0.000000e+00 : f32
    %10 = vector.shape_cast %9 : vector<1x128xi1> to vector<1x128xi1>
    %11 = vector.broadcast %10 : vector<1x128xi1> to vector<8x128xi1>
    %12 = vector.broadcast %cst_2 : f32 to vector<8x128xf32>
    %13 = arith.select %11, %6, %12 : vector<8x128xi1>, vector<8x128xf32>
    %14 = arith.mulf %13, %13 : vector<8x128xf32>
    %cst_3 = arith.constant dense<0.000000e+00> : vector<8xf32>
    %15 = vector.multi_reduction <add>, %14, %cst_3 [1] : vector<8x128xf32> to vector<8xf32>
    %16 = vector.shape_cast %15 : vector<8xf32> to vector<8x1xf32>
    %cst_4 = arith.constant 0.0322580636 : f32
    %17 = vector.broadcast %cst_4 : f32 to vector<8x1xf32>
    %18 = arith.mulf %16, %17 : vector<8x1xf32>
    %19 = math.sqrt %18 : vector<8x1xf32>
    %cst_5 = arith.constant 9.99999997E-7 : f32
    %20 = vector.broadcast %cst_5 : f32 to vector<8x1xf32>
    %21 = arith.addf %19, %20 : vector<8x1xf32>
    %cst_6 = arith.constant 1.000000e+00 : f32
    %22 = vector.broadcast %cst_6 : f32 to vector<8x1xf32>
    %23 = arith.divf %22, %21 : vector<8x1xf32>
    %c0_7 = arith.constant 0 : index
    %c0_8 = arith.constant 0 : index
    %24 = vector.load %arg3[%c0_7, %c0_8] : memref<8x128xf32, #tpu.memory_space<vmem>>, vector<8x128xf32>
    %25 = vector.extract_strided_slice %24 {offsets = [0, 0], sizes = [1, 128], strides = [1, 1]} : vector<8x128xf32> to vector<1x128xf32>
    %26 = vector.extract_strided_slice %24 {offsets = [1, 0], sizes = [1, 128], strides = [1, 1]} : vector<8x128xf32> to vector<1x128xf32>
    %27 = vector.extract_strided_slice %24 {offsets = [2, 0], sizes = [1, 128], strides = [1, 1]} : vector<8x128xf32> to vector<1x128xf32>
    %28 = vector.broadcast %23 : vector<8x1xf32> to vector<8x128xf32>
    %29 = arith.mulf %13, %28 : vector<8x128xf32>
    %30 = vector.broadcast %25 : vector<1x128xf32> to vector<8x128xf32>
    %31 = arith.mulf %30, %29 : vector<8x128xf32>
    %32 = vector.broadcast %26 : vector<1x128xf32> to vector<8x128xf32>
    %33 = arith.addf %31, %32 : vector<8x128xf32>
    %c0_9 = arith.constant 0 : index
    %c0_10 = arith.constant 0 : index
    %34 = vector.load %arg2[%c0_9, %c0_10] : memref<128x128xf32, #tpu.memory_space<vmem>>, vector<128x128xf32>
    %cst_11 = arith.constant dense<0.000000e+00> : vector<8x128xf32>
    %35 = tpu.matmul %33, %34, %cst_11 {dimension_numbers = #tpu.dot_dimension_numbers<[1], [0], [0], [1], [0, 0, 1, 1], [], []>} : vector<8x128xf32>, vector<128x128xf32>, vector<8x128xf32> -> vector<8x128xf32>
    %36 = vector.broadcast %27 : vector<1x128xf32> to vector<8x128xf32>
    %37 = arith.addf %35, %36 : vector<8x128xf32>
    %38 = arith.addf %0, %37 : vector<8x128xf32>
    %c0_12 = arith.constant 0 : index
    %c0_13 = arith.constant 0 : index
    %39 = vector.load %arg4[%c0_12, %c0_13] : memref<8x128xf32, #tpu.memory_space<vmem>>, vector<8x128xf32>
    tpu.vector_store %arg4[%c0_12, %c0_13], %38 {strides = array<i32>} : memref<8x128xf32, #tpu.memory_space<vmem>>, vector<8x128xf32>,
    return
  }
  func.func @transform_0(%arg0: i32) -> (i32, i32) {
    %c0_i32 = arith.constant 0 : i32
    %c0_i32_0 = arith.constant 0 : i32
    return %arg0, %c0_i32 : i32, i32
  }
  func.func @transform_1(%arg0: i32) -> (i32, i32) {
    %c0_i32 = arith.constant 0 : i32
    %c0_i32_0 = arith.constant 0 : i32
    %c0_i32_1 = arith.constant 0 : i32
    return %c0_i32, %c0_i32_0 : i32, i32
  }
  func.func @transform_2(%arg0: i32) -> (i32, i32) {
    %c0_i32 = arith.constant 0 : i32
    %c0_i32_0 = arith.constant 0 : i32
    %c0_i32_1 = arith.constant 0 : i32
    return %c0_i32, %c0_i32_0 : i32, i32
  }
  func.func @transform_3(%arg0: i32) -> (i32, i32) {
    %c0_i32 = arith.constant 0 : i32
    %c0_i32_0 = arith.constant 0 : i32
    return %arg0, %c0_i32 : i32, i32
  }
}

</mosaic_0001>

<bundles_post_ra>
// kernel: sublayer_connection.1
= control target key start
LH: loop header
LB: loop body
LE: loop exit
PB: predicated region body
PF: predicated region fallthrough
CT: control target
= control target key end

     0   :  { %s356_s12 = smov 0   ;;  %s441_s0 = inlined_call_operand.vmem [shape: f32[16,128], index: 0, kind: input, shape index: {}]   ;;  %s442_s1 = inlined_call_operand.vmem [shape: f32[128,128], index: 1, kind: input, shape index: {}]   ;;  %s443_s2 = inlined_call_operand.vmem [shape: f32[8,128], index: 2, kind: input, shape index: {}]   ;;  %s444_s3 = inlined_call_operand.vmem [shape: f32[16,128], index: 3, kind: output, shape index: {}]  }
   0x1 LB: > { %s307_s13 = sadd.s32 4294967295, %s334_s12   ;;  %p311_p0 = scmp.ge.s32.totalorder %s334_s12, 1  ;;  %s334_s12 = sphi %s356_s12, %s13_s12  }
   0x2   : > { %p136_p1 = scmp.lt.s32.totalorder %s334_s12, 3 }
   0x4   : > { %p137_p2 = pnand %p311_p0, %p136_p1 }
   0x5   : > { %p158_p3 = scmp.lt.s32.totalorder (!%p137_p2), %s307_s13, 1 }
   0x6   : > { %140 = sbr.rel (%p137_p2) target bundleno = 433 (0x1b1), region = 32 }
   0xb   : > { %s446_s13 = smov (!%p158_p3, %s307_s13), 1  ;;  %v171_v1 = vlaneseq  ;;  %v230_v8 = vld [vmem:[%s442_s1 + $0x78] sm:$0xff]  ;;  %v229_v9 = vld [vmem:[%s442_s1 + $0x70] sm:$0xff]  ;;  %v228_v10 = vld [vmem:[%s442_s1 + $0x68] sm:$0xff] }
   0xc   : > { %s312_s14 = sshll.u32 %s446_s13, 3  ;;  %232 = vmatpush.msra.mxu0 %v230_v8  ;;  %v227_v11 = vld [vmem:[%s442_s1 + $0x60] sm:$0xff]  ;;  %v226_v12 = vld [vmem:[%s442_s1 + $0x58] sm:$0xff]  ;;  %v225_v13 = vld [vmem:[%s442_s1 + $0x50] sm:$0xff] }
   0xd   : > { %s161_s17 = scalar_lea.vmem %s441_s0, %s312_s14  ;;  %v172_v2 = vand.u32 127, %v171_v1  ;;  %v224_v14 = vld [vmem:[%s442_s1 + $0x48] sm:$0xff]  ;;  %v223_v15 = vld [vmem:[%s442_s1 + $0x40] sm:$0xff]  ;;  %v222_v16 = vld [vmem:[%s442_s1 + $0x38] sm:$0xff]  ;;  %s165_s30 = scalar_lea.vmem %s444_s3, %s312_s14 }
   0xe   : > { %v372_v0 = vld [vmem:[%s161_s17] sm:$0xff]  ;;  %233 = vmatpush.msra.mxu0 %v229_v9  ;;  %v221_v19 = vld [vmem:[%s442_s1 + $0x30] sm:$0xff]  ;;  %v220_v20 = vld [vmem:[%s442_s1 + $0x28] sm:$0xff] }
   0xf   : > { %167 = vadd.xlane.f32.xlu0 %v372_v0  ;;  %vm173_vm0 = vcmp.lt.s32.totalorder %v172_v2, 32  ;;  %v219_v21 = vld [vmem:[%s442_s1 + $0x20] sm:$0xff]  ;;  %v218_v22 = vld [vmem:[%s442_s1 + $0x18] sm:$0xff]  ;;  %v217_v24 = vld [vmem:[%s442_s1 + $0x10] sm:$0xff] }
  0x10   : > { %234 = vmatpush.msra.mxu0 %v228_v10  ;;  %v216_v26 = vld [vmem:[%s442_s1 + $0x8] sm:$0xff]  ;;  %v215_v28 = vld [vmem:[%s442_s1] sm:$0xff] }
  0x11   : > { %v209_v43 = vld [vmem:[%s443_s2] sm:$0xff] }
  0x12   : > { %235 = vmatpush.msra.mxu0 %v227_v11  ;;  %v211_v47 = vperm.slane %v209_v43, 0  ;;  %v213_v50 = vperm.slane %v209_v43, 1  ;;  %v231_v53 = vperm.slane %v209_v43, 2 }
  0x14   : > { %236 = vmatpush.msra.mxu0 %v226_v12 }
  0x16   : > { %237 = vmatpush.msra.mxu0 %v225_v13 }
  0x18   : > { %238 = vmatpush.msra.mxu0 %v224_v14 }
  0x1a   : > { %239 = vmatpush.msra.mxu0 %v223_v15 }
  0x1c   : > { %240 = vmatpush.msra.mxu0 %v222_v16 }
  0x1e   : > { %241 = vmatpush.msra.mxu0 %v221_v19 }
  0x20   : > { %242 = vmatpush.msra.mxu0 %v220_v20 }
  0x22   : > { %243 = vmatpush.msra.mxu0 %v219_v21 }
  0x24   : > { %244 = vmatpush.msra.mxu0 %v218_v22 }
  0x26   : > { %245 = vmatpush.msra.mxu0 %v217_v24 }
  0x28   : > { %246 = vmatpush.msra.mxu0 %v216_v26 }
  0x2a   : > { %247 = vmatpush.msra.mxu0 %v215_v28 }
  0x82   : > { %v168_v3 = vpop.xlane.xlu0 %167 }
  0x83   : > { %v169_v4 = vmul.f32 0.03125, %v168_v3 }
  0x85   : > { %v170_v5 = vsub.f32 %v372_v0, %v169_v4 }
  0x87   : > { %v376_v6 = vsel %vm173_vm0, %v170_v5, 0.0 }
  0x88   : > { %v177_v7 = vmul.f32 %v376_v6, %v376_v6 }
  0x8a   : > { %178 = vadd.xlane.f32.xlu0 %v177_v7 }
  0xfd   : > { %v179_v17 = vpop.xlane.xlu0 %178 }
  0xfe   : > { %v180_v18 = vmul.f32 0.032258064, %v179_v17 }
 0x100   : > { %324 = vrsqrt.f32 %v180_v18  ;;  %vm188_vm1 = vcmp.eq.f32.partialorder %v180_v18, inf  ;;  %v191_v33 = vand.u32 2147483648, %v180_v18  ;;  %vm190_vm2 = vcmp.eq.f32.partialorder %v180_v18, 0.0 }
 0x106   : > { %v325_v23 = vpop.eup %324 }
 0x107   : > { %v182_v25 = vmul.f32 %v325_v23, %v180_v18 }
 0x109   : > { %v183_v27 = vmul.f32 %v325_v23, %v182_v25 }
 0x10b   : > { %v184_v29 = vmul.f32 0.5, %v183_v27 }
 0x10d   : > { %v185_v30 = vsub.f32 1.5, %v184_v29 }
 0x10f   : > { %v186_v31 = vmul.f32 %v325_v23, %v185_v30 }
 0x111   : > { %v187_v32 = vmul.f32 %v186_v31, %v180_v18 }
 0x113   : > { %v189_v34 = vsel %vm188_vm1, %v180_v18, %v187_v32 }
 0x114   : > { %v192_v35 = vsel %vm190_vm2, %v191_v33, %v189_v34 }
 0x115   : > { %v193_v36 = vadd.f32 1e-06, %v192_v35 }
 0x117   : > { %326 = vrcp.f32 %v193_v36  ;;  %v205_v40 = vand.u32 2147483648, %v193_v36  ;;  %v203_v42 = vand.u32 2147483647, %v193_v36  ;;  %vm199_vm4 = vweird.f32 %v193_v36 }
 0x119   : > { %v206_v45 = vor.u32 1.1754944e-38, %v205_v40  ;;  %vm204_vm6 = vcmp.eq.f32.partialorder %v203_v42, 8.507059e+37 }
 0x11d   : > { %v327_v37 = vpop.eup %326 }
 0x11e   : > { %v195_v38 = vmul.f32 %v327_v37, %v193_v36  ;;  %vm200_vm3 = vweird.f32 %v327_v37 }
 0x11f   : > { %vm201_vm5 = vmor %vm199_vm4, %vm200_vm3 }
 0x120   : > { %v196_v39 = vsub.f32 1.0, %v195_v38 }
 0x122   : > { %v197_v41 = vmul.f32 %v327_v37, %v196_v39 }
 0x124   : > { %v198_v44 = vadd.f32 %v327_v37, %v197_v41 }
 0x126   : > { %v202_v46 = vsel %vm201_vm5, %v327_v37, %v198_v44 }
 0x127   : > { %v207_v48 = vsel %vm204_vm6, %v206_v45, %v202_v46 }
 0x128   : > { %v210_v49 = vmul.f32 %v207_v48, %v376_v6 }
 0x12a   : > { %v212_v51 = vmul.f32 %v211_v47, %v210_v49 }
 0x12c   : > { %v214_v52 = vadd.f32 %v213_v50, %v212_v51 }
 0x12e   : > { %248 = vmatmul.f32.vlgmr.msra.gmra.mxu0 %v214_v52 }
 0x1ab   : > { %v249_v54 = vpop.f32.mrf.mxu0 }
 0x1ac   : > { %v250_v55 = vadd.f32 %v249_v54, %v231_v53 }
 0x1ae   : > { %v252_v56 = vadd.f32 %v250_v55, %v372_v0 }
 0x1b0   : > { %253 = vst [vmem:[%s165_s30] sm:$0xff] %v252_v56 }
 0x1b1 PF: > { %s13_s12 = sadd.s32 1, %s334_s12  }
 0x1b2   : > { %p10_p4 = scmp.ge.s32.totalorder %s13_s12, 4  }
 0x1b4   :  { %12 = sbr.rel (!%p10_p4) target bundleno = 1 (0x1), region = 62 }

</bundles_post_ra>
